<compile_context>
chip_gen: v7x
topology: tpu7x:2x2x1
jax: 0.10.0
libtpu: 0.0.40
codegen_flags: <defaults>
</compile_context>

<pallas_src>
import math
from functools import partial

import jax
import jax.numpy as jnp
from jax.experimental import pallas as pl
from jax.experimental.pallas import tpu as pltpu


# --------------------------- fused conv kernel ------------------------------

def _conv_kernel(*refs, stride, kh, kw, hs, ho, wo, apply_act, has_res, slope):
    """One image per grid step.  Input slab is already padded (and phase-split
    for stride 2, flattened as (P*hs, Ws, Cin)).  Applies BN scale/shift +
    LeakyReLU to the input, does kh*kw accumulating bf16 MXU matmuls, adds
    bias (+ residual), writes the bf16 output and its per-channel sum/sumsq."""
    if has_res:
        (x_ref, sc_ref, sh_ref, w_ref, b_ref, r_ref,
         o_ref, sum_ref, sq_ref) = refs
    else:
        x_ref, sc_ref, sh_ref, w_ref, b_ref, o_ref, sum_ref, sq_ref = refs
        r_ref = None

    cin = x_ref.shape[-1]
    cout = w_ref.shape[-1]
    m = ho * wo

    xv = x_ref[0]                                     # (P*hs, Ws, Cin)
    if apply_act:
        xf = xv.astype(jnp.float32) * sc_ref[...] + sh_ref[...]
        xf = jnp.where(xf >= 0.0, xf, slope * xf)     # LeakyReLU(0.1)
        xb = xf.astype(jnp.bfloat16)
    else:
        xb = xv.astype(jnp.bfloat16)

    acc = None
    t = 0
    for i in range(kh):
        for j in range(kw):
            plane = (i % stride) * stride + (j % stride)
            r0 = plane * hs + i // stride
            c0 = j // stride
            patch = xb[r0:r0 + ho, c0:c0 + wo, :].reshape(m, cin)
            contrib = jnp.dot(patch, w_ref[t],
                              preferred_element_type=jnp.float32)
            acc = contrib if acc is None else acc + contrib
            t += 1

    acc = acc + b_ref[...]                            # conv bias (f32 epilogue)
    if has_res:
        acc = acc + r_ref[0].reshape(m, cout).astype(jnp.float32)

    # single-pass stats of the (post-residual) output for the next BatchNorm
    sum_ref[...] = jnp.sum(acc, axis=0, keepdims=True).reshape(1, 1, cout)
    sq_ref[...] = jnp.sum(acc * acc, axis=0, keepdims=True).reshape(1, 1, cout)
    o_ref[...] = acc.reshape(1, ho, wo, cout).astype(o_ref.dtype)


def conv_layer(x, w, b, *, stride, scale=None, shift=None, residual=None,
               apply_act=True, slope=0.1):
    """x: (N,H,W,Cin) bf16.  w: (kh,kw,Cin,Cout) f32.  Returns
    (out bf16 (N,Ho,Wo,Cout), per-image sum (N,1,Cout), sumsq (N,1,Cout),
    count = N*Ho*Wo)."""
    N, H, W, cin = x.shape
    kh, kw, _, cout = w.shape

    if kh == 1:                                       # 1x1 shortcut conv
        if stride > 1:                                # fold stride in XLA glue
            x = x[:, ::stride, ::stride, :]
            N, H, W, cin = x.shape
        xs, s_eff, hs = x, 1, H
        Ho, Wo = H, W
    else:                                             # 3x3, padding = 1
        pad = (kh - 1) // 2
        Ho = (H + 2 * pad - kh) // stride + 1
        Wo = (W + 2 * pad - kw) // stride + 1
        xp = jnp.pad(x, ((0, 0), (pad, pad), (pad, pad), (0, 0)))
        Hp, Wp = H + 2 * pad, W + 2 * pad
        if stride == 1:
            xs, s_eff, hs = xp, 1, Hp
        else:
            s = stride
            assert Hp % s == 0 and Wp % s == 0
            hs, ws = Hp // s, Wp // s
            # space-to-batch phase split: every tap becomes an unstrided slice
            xs = xp.reshape(N, hs, s, ws, s, cin)
            xs = jnp.transpose(xs, (0, 2, 4, 1, 3, 5)).reshape(
                N, s * s * hs, ws, cin)
            s_eff = s

    wt = w.reshape(kh * kw, cin, cout).astype(jnp.bfloat16)
    bb = b.reshape(1, cout).astype(jnp.float32)
    if scale is None:
        scale = jnp.ones((1, cin), jnp.float32)
        shift = jnp.zeros((1, cin), jnp.float32)

    in_specs = [
        pl.BlockSpec((1,) + tuple(xs.shape[1:]), lambda n: (n, 0, 0, 0)),
        pl.BlockSpec((1, cin), lambda n: (0, 0)),
        pl.BlockSpec((1, cin), lambda n: (0, 0)),
        pl.BlockSpec((kh * kw, cin, cout), lambda n: (0, 0, 0)),
        pl.BlockSpec((1, cout), lambda n: (0, 0)),
    ]
    args = [xs, scale, shift, wt, bb]
    if residual is not None:
        in_specs.append(pl.BlockSpec((1, Ho, Wo, cout), lambda n: (n, 0, 0, 0)))
        args.append(residual.astype(jnp.bfloat16))

    flops = 2 * N * Ho * Wo * kh * kw * cin * cout
    bytes_accessed = int(
        xs.size * xs.dtype.itemsize + wt.size * 2 + N * Ho * Wo * cout * 2
        + 2 * N * cout * 4
        + (N * Ho * Wo * cout * 2 if residual is not None else 0))

    out, ssum, ssq = pl.pallas_call(
        partial(_conv_kernel, stride=s_eff, kh=kh, kw=kw, hs=hs, ho=Ho, wo=Wo,
                apply_act=apply_act, has_res=residual is not None, slope=slope),
        grid=(N,),
        in_specs=in_specs,
        out_specs=(
            pl.BlockSpec((1, Ho, Wo, cout), lambda n: (n, 0, 0, 0)),
            pl.BlockSpec((1, 1, cout), lambda n: (n, 0, 0)),
            pl.BlockSpec((1, 1, cout), lambda n: (n, 0, 0)),
        ),
        out_shape=(
            jax.ShapeDtypeStruct((N, Ho, Wo, cout), jnp.bfloat16),
            jax.ShapeDtypeStruct((N, 1, cout), jnp.float32),
            jax.ShapeDtypeStruct((N, 1, cout), jnp.float32),
        ),
        compiler_params=pltpu.CompilerParams(
            dimension_semantics=("parallel",)),
        cost_estimate=pl.CostEstimate(flops=flops, transcendentals=0,
                                      bytes_accessed=bytes_accessed),
    )(*args)
    return out, ssum, ssq, N * Ho * Wo


# -------------------- BN finalize (tiny, channel-sized glue) ----------------

def bn_scale_shift(ssum, ssq, count, gamma, beta, eps=1e-3):
    s = jnp.sum(ssum, axis=(0, 1))
    q = jnp.sum(ssq, axis=(0, 1))
    mean = s / count
    var = jnp.maximum(q / count - mean * mean, 0.0)   # biased var (training BN)
    scale = gamma * jax.lax.rsqrt(var + eps)
    shift = beta - mean * scale
    return scale.reshape(1, -1), shift.reshape(1, -1)


# ------------- fused tail: bn_final + LeakyReLU + avgpool + fc + ReLU -------

def _tail_kernel(x_ref, sc_ref, sh_ref, w_ref, b_ref, feat_ref, logit_ref, *,
                 slope):
    _, H, W, C = x_ref.shape
    ncls = w_ref.shape[-1]
    x = x_ref[0].astype(jnp.float32)
    y = x * sc_ref[...] + sh_ref[...]
    y = jnp.where(y >= 0.0, y, slope * y)
    feat = jnp.mean(y.reshape(H * W, C), axis=0, keepdims=True)     # (1, C)
    feat_ref[...] = feat.reshape(1, 1, C)
    logits = jnp.dot(feat, w_ref[...],
                     preferred_element_type=jnp.float32) + b_ref[...]
    logit_ref[...] = jnp.maximum(logits, 0.0).reshape(1, 1, ncls)


def tail(x, scale, shift, wfc, bfc, slope=0.1):
    N, H, W, C = x.shape
    ncls = wfc.shape[0]
    feat, logits = pl.pallas_call(
        partial(_tail_kernel, slope=slope),
        grid=(N,),
        in_specs=[
            pl.BlockSpec((1, H, W, C), lambda n: (n, 0, 0, 0)),
            pl.BlockSpec((1, C), lambda n: (0, 0)),
            pl.BlockSpec((1, C), lambda n: (0, 0)),
            pl.BlockSpec((C, ncls), lambda n: (0, 0)),
            pl.BlockSpec((1, ncls), lambda n: (0, 0)),
        ],
        out_specs=(
            pl.BlockSpec((1, 1, C), lambda n: (n, 0, 0)),
            pl.BlockSpec((1, 1, ncls), lambda n: (n, 0, 0)),
        ),
        out_shape=(
            jax.ShapeDtypeStruct((N, 1, C), jnp.float32),
            jax.ShapeDtypeStruct((N, 1, ncls), jnp.float32),
        ),
        compiler_params=pltpu.CompilerParams(
            dimension_semantics=("parallel",)),
    )(x, scale, shift, wfc.T.astype(jnp.float32), bfc.reshape(1, ncls))
    return feat.reshape(N, C), logits.reshape(N, ncls)


# ----------------------- standalone fc (only_fc path) -----------------------

def _fc_kernel(x_ref, w_ref, b_ref, o_ref):
    y = jnp.dot(x_ref[...].astype(jnp.float32), w_ref[...],
                preferred_element_type=jnp.float32) + b_ref[...]
    o_ref[...] = jnp.maximum(y, 0.0)


def fc_forward(feat, wfc, bfc):
    B, C = feat.shape
    ncls = wfc.shape[0]
    vspec = pl.BlockSpec(memory_space=pltpu.MemorySpace.VMEM)
    return pl.pallas_call(
        _fc_kernel,
        out_shape=jax.ShapeDtypeStruct((B, ncls), jnp.float32),
        in_specs=[vspec, vspec, vspec],
        out_specs=vspec,
    )(feat.astype(jnp.float32), wfc.T.astype(jnp.float32),
      bfc.reshape(1, ncls).astype(jnp.float32))


# --------------------------------- model ------------------------------------

def build_params(key, depth=10, widen_factor=2, num_classes=10, first_stride=1):
    assert (depth - 4) % 6 == 0
    channels = [16, 16 * widen_factor, 32 * widen_factor, 64 * widen_factor]
    n = (depth - 4) // 6
    keys = iter(jax.random.split(key, 256))

    def conv_p(cin, cout, k):
        fan_out = cout * k * k
        std = math.sqrt(2.0 / ((1.0 + 0.1 ** 2) * fan_out))   # kaiming fan_out
        w = std * jax.random.normal(next(keys), (k, k, cin, cout), jnp.float32)
        b = 0.01 * jax.random.normal(next(keys), (cout,), jnp.float32)
        return w, b

    def bn_p(c):
        return jnp.ones((c,), jnp.float32), jnp.zeros((c,), jnp.float32)

    params = {"conv1": conv_p(3, channels[0], 3)}
    strides = [first_stride, 2, 2]
    blocks = []
    for bi in range(3):
        cin, cout = channels[bi], channels[bi + 1]
        layers = []
        for li in range(n):
            in_p = cin if li == 0 else cout
            s = strides[bi] if li == 0 else 1
            lp = {
                "bn1": bn_p(in_p),
                "conv1": conv_p(in_p, cout, 3),
                "bn2": bn_p(cout),
                "conv2": conv_p(cout, cout, 3),
                "stride": s,
                "equal": in_p == cout,
            }
            if not lp["equal"]:
                lp["sc"] = conv_p(in_p, cout, 1)
            layers.append(lp)
        blocks.append(layers)
    params["blocks"] = blocks
    params["bn_final"] = bn_p(channels[3])

    # TODO(synk): ETF init uses scipy.stats.ortho_group; deterministic
    # row-normalized random matrix instead (init-only, forward unchanged).
    wfc = jax.random.normal(next(keys), (num_classes, channels[3]), jnp.float32)
    wfc = wfc / jnp.linalg.norm(wfc, axis=-1, keepdims=True)
    params["fc"] = (wfc, jnp.zeros((num_classes,), jnp.float32))
    return params


def basic_block(lp, x, stats):
    stride, equal = lp["stride"], lp["equal"]
    g1, b1 = lp["bn1"]
    scale1, shift1 = bn_scale_shift(*stats, g1, b1)
    w1, bb1 = lp["conv1"]
    h1, s1, q1, c1 = conv_layer(x, w1, bb1, stride=stride,
                                scale=scale1, shift=shift1, apply_act=True)
    if equal:
        res = x                      # raw (pre-BN) block input, like the PyTorch code
    else:
        # 1x1 shortcut consumes relu1(bn1(x)) at the same stride (BN fused in)
        ws, bs = lp["sc"]
        res, _, _, _ = conv_layer(x, ws, bs, stride=stride,
                                  scale=scale1, shift=shift1, apply_act=True)
    g2, b2 = lp["bn2"]
    scale2, shift2 = bn_scale_shift(s1, q1, c1, g2, b2)
    w2, bb2 = lp["conv2"]
    # drop_rate == 0.0 -> dropout is identity; residual add fused into conv2
    out, s2, q2, c2 = conv_layer(h1, w2, bb2, stride=1,
                                 scale=scale2, shift=shift2, apply_act=True,
                                 residual=res)
    return out, (s2, q2, c2)


def forward(params, x, only_fc=False, only_feat=False):
    wfc, bfc = params["fc"]
    if only_fc:
        return fc_forward(x, wfc, bfc)
    xh = jnp.transpose(x, (0, 2, 3, 1)).astype(jnp.bfloat16)   # NCHW -> NHWC
    w1, b1 = params["conv1"]
    out, ssum, ssq, cnt = conv_layer(xh, w1, b1, stride=1, apply_act=False)
    stats = (ssum, ssq, cnt)
    for layers in params["blocks"]:
        for lp in layers:
            out, stats = basic_block(lp, out, stats)
    gf, bf_ = params["bn_final"]
    scale, shift = bn_scale_shift(*stats, gf, bf_)
    feat, logits = tail(out, scale, shift, wfc, bfc)
    if only_feat:
        return feat
    return {"logits": logits, "feat": feat}


# ---------------------------------- main -------------------------------------

if __name__ == "__main__":
    key = jax.random.PRNGKey(0)
    pkey, xkey, ckey, wkey = jax.random.split(key, 4)

    # Isolated numerical check of the trickiest path: 3x3 stride-2 conv
    # (phase-split tap extraction) vs. XLA's conv on the same bf16 inputs.
    xc = jax.random.normal(ckey, (2, 8, 8, 16), jnp.float32).astype(jnp.bfloat16)
    wc = 0.1 * jax.random.normal(wkey, (3, 3, 16, 32), jnp.float32)
    bc = jnp.zeros((32,), jnp.float32)
    out_c, _, _, _ = conv_layer(xc, wc, bc, stride=2, apply_act=False)
    ref = jax.lax.conv_general_dilated(
        xc.astype(jnp.float32), wc.astype(jnp.bfloat16).astype(jnp.float32),
        window_strides=(2, 2), padding=((1, 1), (1, 1)),
        dimension_numbers=("NHWC", "HWIO", "NHWC")) + bc
    assert bool(jnp.allclose(out_c.astype(jnp.float32), ref,
                             atol=5e-2, rtol=5e-2))

    # Full WideResNet forward: depth=10, widen_factor=2 -> channels [16,32,64,128]
    params = build_params(pkey, depth=10, widen_factor=2,
                          num_classes=10, first_stride=1)
    x = jax.random.normal(xkey, (2, 3, 16, 16), jnp.float32)   # NCHW like PyTorch
    fwd = jax.jit(partial(forward, params))
    out = jax.block_until_ready(fwd(x))
    assert out["logits"].shape == (2, 10)
    assert out["feat"].shape == (2, 128)
    assert bool(jnp.all(jnp.isfinite(out["logits"])))
    assert bool(jnp.all(out["logits"] >= 0))
    assert bool(jnp.all(jnp.isfinite(out["feat"])))
    print("KERNEL_OK")
</pallas_src>

<mosaic_0001>
module attributes {stable_mosaic.version = 11 : i64} {
  func.func @_conv_kernel(%arg0: i32, %arg1: memref<1x20x5x16xbf16, #tpu.memory_space<vmem>>, %arg2: memref<1x16xf32, #tpu.memory_space<vmem>>, %arg3: memref<1x16xf32, #tpu.memory_space<vmem>>, %arg4: memref<9x16x32xbf16, #tpu.memory_space<vmem>>, %arg5: memref<1x32xf32, #tpu.memory_space<vmem>>, %arg6: memref<1x4x4x32xbf16, #tpu.memory_space<vmem>>, %arg7: memref<1x1x32xf32, #tpu.memory_space<vmem>>, %arg8: memref<1x1x32xf32, #tpu.memory_space<vmem>>) attributes {dimension_semantics = [#tpu.dimension_semantics<parallel>], iteration_bounds = array<i64: 2>, scalar_prefetch = 0 : i64, scratch_operands = 0 : i64, tpu.core_type = #tpu.core_type<tc>, window_params = [{transform_indices = @transform_0, window_bounds = array<i64: 1, 20, 5, 16>}, {pipeline_mode = #tpu.pipeline_mode<synchronous>, transform_indices = @transform_1, window_bounds = array<i64: 1, 16>}, {pipeline_mode = #tpu.pipeline_mode<synchronous>, transform_indices = @transform_2, window_bounds = array<i64: 1, 16>}, {pipeline_mode = #tpu.pipeline_mode<synchronous>, transform_indices = @transform_3, window_bounds = array<i64: 9, 16, 32>}, {pipeline_mode = #tpu.pipeline_mode<synchronous>, transform_indices = @transform_4, window_bounds = array<i64: 1, 32>}, {transform_indices = @transform_5, window_bounds = array<i64: 1, 4, 4, 32>}, {transform_indices = @transform_6, window_bounds = array<i64: 1, 1, 32>}, {transform_indices = @transform_7, window_bounds = array<i64: 1, 1, 32>}]} {
    %c0 = arith.constant 0 : index
    %c0_0 = arith.constant 0 : index
    %c0_1 = arith.constant 0 : index
    %c0_2 = arith.constant 0 : index
    %0 = vector.load %arg1[%c0, %c0_0, %c0_1, %c0_2] : memref<1x20x5x16xbf16, #tpu.memory_space<vmem>>, vector<1x20x5x16xbf16>
    %1 = vector.shape_cast %0 : vector<1x20x5x16xbf16> to vector<20x5x16xbf16>
    %2 = vector.extract_strided_slice %1 {offsets = [0, 0, 0], sizes = [4, 4, 16], strides = [1, 1, 1]} : vector<20x5x16xbf16> to vector<4x4x16xbf16>
    %3 = vector.shape_cast %2 : vector<4x4x16xbf16> to vector<16x16xbf16>
    %c0_3 = arith.constant 0 : index
    %c0_4 = arith.constant 0 : index
    %c0_5 = arith.constant 0 : index
    %4 = vector.load %arg4[%c0_3, %c0_4, %c0_5] : memref<9x16x32xbf16, #tpu.memory_space<vmem>>, vector<1x16x32xbf16>
    %5 = vector.shape_cast %4 : vector<1x16x32xbf16> to vector<16x32xbf16>
    %cst = arith.constant dense<0.000000e+00> : vector<16x32xf32>
    %6 = tpu.matmul %3, %5, %cst {dimension_numbers = #tpu.dot_dimension_numbers<[1], [0], [0], [1], [0, 0, 1, 1], [], []>} : vector<16x16xbf16>, vector<16x32xbf16>, vector<16x32xf32> -> vector<16x32xf32>
    %7 = vector.extract_strided_slice %1 {offsets = [5, 0, 0], sizes = [4, 4, 16], strides = [1, 1, 1]} : vector<20x5x16xbf16> to vector<4x4x16xbf16>
    %8 = vector.shape_cast %7 : vector<4x4x16xbf16> to vector<16x16xbf16>
    %c1 = arith.constant 1 : index
    %c0_6 = arith.constant 0 : index
    %c0_7 = arith.constant 0 : index
    %9 = vector.load %arg4[%c1, %c0_6, %c0_7] : memref<9x16x32xbf16, #tpu.memory_space<vmem>>, vector<1x16x32xbf16>
    %10 = vector.shape_cast %9 : vector<1x16x32xbf16> to vector<16x32xbf16>
    %cst_8 = arith.constant dense<0.000000e+00> : vector<16x32xf32>
    %11 = tpu.matmul %8, %10, %cst_8 {dimension_numbers = #tpu.dot_dimension_numbers<[1], [0], [0], [1], [0, 0, 1, 1], [], []>} : vector<16x16xbf16>, vector<16x32xbf16>, vector<16x32xf32> -> vector<16x32xf32>
    %12 = arith.addf %6, %11 : vector<16x32xf32>
    %13 = vector.extract_strided_slice %1 {offsets = [0, 1, 0], sizes = [4, 4, 16], strides = [1, 1, 1]} : vector<20x5x16xbf16> to vector<4x4x16xbf16>
    %14 = vector.shape_cast %13 : vector<4x4x16xbf16> to vector<16x16xbf16>
    %c2 = arith.constant 2 : index
    %c0_9 = arith.constant 0 : index
    %c0_10 = arith.constant 0 : index
    %15 = vector.load %arg4[%c2, %c0_9, %c0_10] : memref<9x16x32xbf16, #tpu.memory_space<vmem>>, vector<1x16x32xbf16>
    %16 = vector.shape_cast %15 : vector<1x16x32xbf16> to vector<16x32xbf16>
    %cst_11 = arith.constant dense<0.000000e+00> : vector<16x32xf32>
    %17 = tpu.matmul %14, %16, %cst_11 {dimension_numbers = #tpu.dot_dimension_numbers<[1], [0], [0], [1], [0, 0, 1, 1], [], []>} : vector<16x16xbf16>, vector<16x32xbf16>, vector<16x32xf32> -> vector<16x32xf32>
    %18 = arith.addf %12, %17 : vector<16x32xf32>
    %19 = vector.extract_strided_slice %1 {offsets = [10, 0, 0], sizes = [4, 4, 16], strides = [1, 1, 1]} : vector<20x5x16xbf16> to vector<4x4x16xbf16>
    %20 = vector.shape_cast %19 : vector<4x4x16xbf16> to vector<16x16xbf16>
    %c3 = arith.constant 3 : index
    %c0_12 = arith.constant 0 : index
    %c0_13 = arith.constant 0 : index
    %21 = vector.load %arg4[%c3, %c0_12, %c0_13] : memref<9x16x32xbf16, #tpu.memory_space<vmem>>, vector<1x16x32xbf16>
    %22 = vector.shape_cast %21 : vector<1x16x32xbf16> to vector<16x32xbf16>
    %cst_14 = arith.constant dense<0.000000e+00> : vector<16x32xf32>
    %23 = tpu.matmul %20, %22, %cst_14 {dimension_numbers = #tpu.dot_dimension_numbers<[1], [0], [0], [1], [0, 0, 1, 1], [], []>} : vector<16x16xbf16>, vector<16x32xbf16>, vector<16x32xf32> -> vector<16x32xf32>
    %24 = arith.addf %18, %23 : vector<16x32xf32>
    %25 = vector.extract_strided_slice %1 {offsets = [15, 0, 0], sizes = [4, 4, 16], strides = [1, 1, 1]} : vector<20x5x16xbf16> to vector<4x4x16xbf16>
    %26 = vector.shape_cast %25 : vector<4x4x16xbf16> to vector<16x16xbf16>
    %c4 = arith.constant 4 : index
    %c0_15 = arith.constant 0 : index
    %c0_16 = arith.constant 0 : index
    %27 = vector.load %arg4[%c4, %c0_15, %c0_16] : memref<9x16x32xbf16, #tpu.memory_space<vmem>>, vector<1x16x32xbf16>
    %28 = vector.shape_cast %27 : vector<1x16x32xbf16> to vector<16x32xbf16>
    %cst_17 = arith.constant dense<0.000000e+00> : vector<16x32xf32>
    %29 = tpu.matmul %26, %28, %cst_17 {dimension_numbers = #tpu.dot_dimension_numbers<[1], [0], [0], [1], [0, 0, 1, 1], [], []>} : vector<16x16xbf16>, vector<16x32xbf16>, vector<16x32xf32> -> vector<16x32xf32>
    %30 = arith.addf %24, %29 : vector<16x32xf32>
    %31 = vector.extract_strided_slice %1 {offsets = [10, 1, 0], sizes = [4, 4, 16], strides = [1, 1, 1]} : vector<20x5x16xbf16> to vector<4x4x16xbf16>
    %32 = vector.shape_cast %31 : vector<4x4x16xbf16> to vector<16x16xbf16>
    %c5 = arith.constant 5 : index
    %c0_18 = arith.constant 0 : index
    %c0_19 = arith.constant 0 : index
    %33 = vector.load %arg4[%c5, %c0_18, %c0_19] : memref<9x16x32xbf16, #tpu.memory_space<vmem>>, vector<1x16x32xbf16>
    %34 = vector.shape_cast %33 : vector<1x16x32xbf16> to vector<16x32xbf16>
    %cst_20 = arith.constant dense<0.000000e+00> : vector<16x32xf32>
    %35 = tpu.matmul %32, %34, %cst_20 {dimension_numbers = #tpu.dot_dimension_numbers<[1], [0], [0], [1], [0, 0, 1, 1], [], []>} : vector<16x16xbf16>, vector<16x32xbf16>, vector<16x32xf32> -> vector<16x32xf32>
    %36 = arith.addf %30, %35 : vector<16x32xf32>
    %37 = vector.extract_strided_slice %1 {offsets = [1, 0, 0], sizes = [4, 4, 16], strides = [1, 1, 1]} : vector<20x5x16xbf16> to vector<4x4x16xbf16>
    %38 = vector.shape_cast %37 : vector<4x4x16xbf16> to vector<16x16xbf16>
    %c6 = arith.constant 6 : index
    %c0_21 = arith.constant 0 : index
    %c0_22 = arith.constant 0 : index
    %39 = vector.load %arg4[%c6, %c0_21, %c0_22] : memref<9x16x32xbf16, #tpu.memory_space<vmem>>, vector<1x16x32xbf16>
    %40 = vector.shape_cast %39 : vector<1x16x32xbf16> to vector<16x32xbf16>
    %cst_23 = arith.constant dense<0.000000e+00> : vector<16x32xf32>
    %41 = tpu.matmul %38, %40, %cst_23 {dimension_numbers = #tpu.dot_dimension_numbers<[1], [0], [0], [1], [0, 0, 1, 1], [], []>} : vector<16x16xbf16>, vector<16x32xbf16>, vector<16x32xf32> -> vector<16x32xf32>
    %42 = arith.addf %36, %41 : vector<16x32xf32>
    %43 = vector.extract_strided_slice %1 {offsets = [6, 0, 0], sizes = [4, 4, 16], strides = [1, 1, 1]} : vector<20x5x16xbf16> to vector<4x4x16xbf16>
    %44 = vector.shape_cast %43 : vector<4x4x16xbf16> to vector<16x16xbf16>
    %c7 = arith.constant 7 : index
    %c0_24 = arith.constant 0 : index
    %c0_25 = arith.constant 0 : index
    %45 = vector.load %arg4[%c7, %c0_24, %c0_25] : memref<9x16x32xbf16, #tpu.memory_space<vmem>>, vector<1x16x32xbf16>
    %46 = vector.shape_cast %45 : vector<1x16x32xbf16> to vector<16x32xbf16>
    %cst_26 = arith.constant dense<0.000000e+00> : vector<16x32xf32>
    %47 = tpu.matmul %44, %46, %cst_26 {dimension_numbers = #tpu.dot_dimension_numbers<[1], [0], [0], [1], [0, 0, 1, 1], [], []>} : vector<16x16xbf16>, vector<16x32xbf16>, vector<16x32xf32> -> vector<16x32xf32>
    %48 = arith.addf %42, %47 : vector<16x32xf32>
    %49 = vector.extract_strided_slice %1 {offsets = [1, 1, 0], sizes = [4, 4, 16], strides = [1, 1, 1]} : vector<20x5x16xbf16> to vector<4x4x16xbf16>
    %50 = vector.shape_cast %49 : vector<4x4x16xbf16> to vector<16x16xbf16>
    %c8 = arith.constant 8 : index
    %c0_27 = arith.constant 0 : index
    %c0_28 = arith.constant 0 : index
    %51 = vector.load %arg4[%c8, %c0_27, %c0_28] : memref<9x16x32xbf16, #tpu.memory_space<vmem>>, vector<1x16x32xbf16>
    %52 = vector.shape_cast %51 : vector<1x16x32xbf16> to vector<16x32xbf16>
    %cst_29 = arith.constant dense<0.000000e+00> : vector<16x32xf32>
    %53 = tpu.matmul %50, %52, %cst_29 {dimension_numbers = #tpu.dot_dimension_numbers<[1], [0], [0], [1], [0, 0, 1, 1], [], []>} : vector<16x16xbf16>, vector<16x32xbf16>, vector<16x32xf32> -> vector<16x32xf32>
    %54 = arith.addf %48, %53 : vector<16x32xf32>
    %c0_30 = arith.constant 0 : index
    %c0_31 = arith.constant 0 : index
    %55 = vector.load %arg5[%c0_30, %c0_31] : memref<1x32xf32, #tpu.memory_space<vmem>>, vector<1x32xf32>
    %56 = vector.broadcast %55 : vector<1x32xf32> to vector<16x32xf32>
    %57 = arith.addf %54, %56 : vector<16x32xf32>
    %cst_32 = arith.constant dense<0.000000e+00> : vector<32xf32>
    %58 = vector.multi_reduction <add>, %57, %cst_32 [0] : vector<16x32xf32> to vector<32xf32>
    %59 = vector.shape_cast %58 : vector<32xf32> to vector<1x32xf32>
    %60 = vector.shape_cast %59 : vector<1x32xf32> to vector<1x1x32xf32>
    %c0_33 = arith.constant 0 : index
    %c0_34 = arith.constant 0 : index
    %c0_35 = arith.constant 0 : index
    %61 = vector.load %arg7[%c0_33, %c0_34, %c0_35] : memref<1x1x32xf32, #tpu.memory_space<vmem>>, vector<1x1x32xf32>
    tpu.vector_store %arg7[%c0_33, %c0_34, %c0_35], %60 {strides = array<i32>} : memref<1x1x32xf32, #tpu.memory_space<vmem>>, vector<1x1x32xf32>,
    %62 = arith.mulf %57, %57 : vector<16x32xf32>
    %cst_36 = arith.constant dense<0.000000e+00> : vector<32xf32>
    %63 = vector.multi_reduction <add>, %62, %cst_36 [0] : vector<16x32xf32> to vector<32xf32>
    %64 = vector.shape_cast %63 : vector<32xf32> to vector<1x32xf32>
    %65 = vector.shape_cast %64 : vector<1x32xf32> to vector<1x1x32xf32>
    %c0_37 = arith.constant 0 : index
    %c0_38 = arith.constant 0 : index
    %c0_39 = arith.constant 0 : index
    %66 = vector.load %arg8[%c0_37, %c0_38, %c0_39] : memref<1x1x32xf32, #tpu.memory_space<vmem>>, vector<1x1x32xf32>
    tpu.vector_store %arg8[%c0_37, %c0_38, %c0_39], %65 {strides = array<i32>} : memref<1x1x32xf32, #tpu.memory_space<vmem>>, vector<1x1x32xf32>,
    %67 = vector.shape_cast %57 : vector<16x32xf32> to vector<1x4x4x32xf32>
    %68 = arith.truncf %67 : vector<1x4x4x32xf32> to vector<1x4x4x32xbf16>
    %c0_40 = arith.constant 0 : index
    %c0_41 = arith.constant 0 : index
    %c0_42 = arith.constant 0 : index
    %c0_43 = arith.constant 0 : index
    %69 = vector.load %arg6[%c0_40, %c0_41, %c0_42, %c0_43] : memref<1x4x4x32xbf16, #tpu.memory_space<vmem>>, vector<1x4x4x32xbf16>
    tpu.vector_store %arg6[%c0_40, %c0_41, %c0_42, %c0_43], %68 {strides = array<i32>} : memref<1x4x4x32xbf16, #tpu.memory_space<vmem>>, vector<1x4x4x32xbf16>,
    return
  }
  func.func @transform_0(%arg0: i32) -> (i32, i32, i32, i32) {
    %c0_i32 = arith.constant 0 : i32
    %c0_i32_0 = arith.constant 0 : i32
    %c0_i32_1 = arith.constant 0 : i32
    %c0_i32_2 = arith.constant 0 : i32
    return %arg0, %c0_i32, %c0_i32_0, %c0_i32_1 : i32, i32, i32, i32
  }
  func.func @transform_1(%arg0: i32) -> (i32, i32) {
    %c0_i32 = arith.constant 0 : i32
    %c0_i32_0 = arith.constant 0 : i32
    %c0_i32_1 = arith.constant 0 : i32
    return %c0_i32, %c0_i32_0 : i32, i32
  }
  func.func @transform_2(%arg0: i32) -> (i32, i32) {
    %c0_i32 = arith.constant 0 : i32
    %c0_i32_0 = arith.constant 0 : i32
    %c0_i32_1 = arith.constant 0 : i32
    return %c0_i32, %c0_i32_0 : i32, i32
  }
  func.func @transform_3(%arg0: i32) -> (i32, i32, i32) {
    %c0_i32 = arith.constant 0 : i32
    %c0_i32_0 = arith.constant 0 : i32
    %c0_i32_1 = arith.constant 0 : i32
    %c0_i32_2 = arith.constant 0 : i32
    return %c0_i32, %c0_i32_0, %c0_i32_1 : i32, i32, i32
  }
  func.func @transform_4(%arg0: i32) -> (i32, i32) {
    %c0_i32 = arith.constant 0 : i32
    %c0_i32_0 = arith.constant 0 : i32
    %c0_i32_1 = arith.constant 0 : i32
    return %c0_i32, %c0_i32_0 : i32, i32
  }
  func.func @transform_5(%arg0: i32) -> (i32, i32, i32, i32) {
    %c0_i32 = arith.constant 0 : i32
    %c0_i32_0 = arith.constant 0 : i32
    %c0_i32_1 = arith.constant 0 : i32
    %c0_i32_2 = arith.constant 0 : i32
    return %arg0, %c0_i32, %c0_i32_0, %c0_i32_1 : i32, i32, i32, i32
  }
  func.func @transform_6(%arg0: i32) -> (i32, i32, i32) {
    %c0_i32 = arith.constant 0 : i32
    %c0_i32_0 = arith.constant 0 : i32
    %c0_i32_1 = arith.constant 0 : i32
    return %arg0, %c0_i32, %c0_i32_0 : i32, i32, i32
  }
  func.func @transform_7(%arg0: i32) -> (i32, i32, i32) {
    %c0_i32 = arith.constant 0 : i32
    %c0_i32_0 = arith.constant 0 : i32
    %c0_i32_1 = arith.constant 0 : i32
    return %arg0, %c0_i32, %c0_i32_0 : i32, i32, i32
  }
}

</mosaic_0001>

<bundles_post_ra>
// kernel: tpu_custom_call.1
= control target key start
LH: loop header
LB: loop body
LE: loop exit
PB: predicated region body
PF: predicated region fallthrough
CT: control target
= control target key end

     0   :  { %13 = vsyncpa [#allocation3], 0  ;;  %s2143_s0 = inlined_call_operand.vmem [shape: bf16[2,20,5,16], index: 0, kind: input, shape index: {}]   ;;  %s2144_s1 = inlined_call_operand.vmem [shape: f32[1,16], index: 1, kind: input, shape index: {}]   ;;  %s2145_s2 = inlined_call_operand.vmem [shape: f32[1,16], index: 2, kind: input, shape index: {}]   ;;  %s2146_s3 = inlined_call_operand.vmem [shape: bf16[9,16,32], index: 3, kind: input, shape index: {}]   ;;  %s2147_s4 = inlined_call_operand.vmem [shape: f32[1,32], index: 4, kind: input, shape index: {}]   ;;  %s2148_s5 = inlined_call_operand.hbm [shape: bf16[2,4,4,32], index: 5, kind: output, shape index: {0}]   ;;  %s2149_s6 = inlined_call_operand.hbm [shape: f32[2,1,32], index: 6, kind: output, shape index: {1}]   ;;  %s2150_s7 = inlined_call_operand.hbm [shape: f32[2,1,32], index: 7, kind: output, shape index: {2}]  }
   0x1   :  { %15 = vsyncpa [#allocation3 + $0x1], 0 }
   0x2   :  { %16 = vsyncpa [#allocation5], 0 }
   0x3   :  { %18 = vsyncpa [#allocation5 + $0x1], 0  ;;  %s1761_s1 = smov 0   ;;  %s1763_s2 = smov 0  }
   0x4   :  { %s1765_s24 = smov 0   ;;  %s1767_s25 = smov 0  }
   0x5 LB: > { %s1782_s26 = sadd.s32 4294967295, %s1711_s25   ;;  %s1390_s27 = sadd.s32 4294967294, %s1711_s25   ;;  %s1711_s25 = sphi %s1767_s25, %s2162_s25   ;;  %s1707_s24 = sphi %s1765_s24, %s2161_s24   ;;  %s1703_s2 = sphi %s1763_s2, %s2160_s2   ;;  %s1699_s1 = sphi %s1761_s1, %s2159_s1  }
   0x6   : > { %s1786_s28 = sadd.s32 1, %s1711_s25   ;;  %s141_s29 = sadd.s32 1, %s1707_s24 }
   0x7   : > { %s138_s30 = ssub.s32 %s1711_s25, %s1786_s28  ;;  %p151_p0 = scmp.ne.s32.totalorder %s1707_s24, %s1703_s2 }
   0x8   : > { %p139_p1 = scmp.eq.s32.totalorder %s138_s30, 0  ;;  %p152_p2 = scmp.eq.s32.totalorder %s1782_s26, 1 }
   0x9   : > { %p157_p3 = scmp.ne.s32.totalorder %s1703_s2, %s1699_s1  ;;  %p158_p4 = scmp.eq.s32.totalorder %s1390_s27, 1 }
   0xa   : > { %s1799_s8 = scalar_select %p139_p1, %s1707_s24, %s141_s29  }
   0xb   : > { %p1801_p5 = por %p152_p2, %p151_p0  ;;  %p1805_p6 = por %p158_p4, %p157_p3 }
   0xc   : > { %p1393_p7 = scmp.ge.s32.totalorder %s1711_s25, 1  ;;  %p248_p8 = scmp.lt.s32.totalorder %s1711_s25, 3 }
   0xe   : > { %p249_p9 = pnand %p1393_p7, %p248_p8 }
   0xf   : > { %v1566_v0 = vld [vmem:[%s2146_s3 + $0x8] sm:$0xff] (!%p249_p9)   ;;  %v326_v1 = vlaneseq (!%p249_p9)  ;;  %v1713_v2 = vmov (!%p249_p9), 0.0   ;;  %v1567_v3 = vld [vmem:[%s2146_s3] sm:$0xff] (!%p249_p9)   ;;  %vm1714_vm0 = vmmov (!%p249_p9), 0   ;;  %p288_p10 = scmp.lt.s32.totalorder (!%p249_p9), %s1782_s26, 1  ;;  %vm344_vm1 = vcmask (!%p249_p9), 130048  }
  0x10   : > { %252 = sbr.rel (%p249_p9) target bundleno = 364 (0x16c), region = 40  ;;  %1457 = vmatprep.subr.bf16.mxu0 (!%p249_p9), %v1713_v2  ;;  %1463 = vmatprep.subr.bf16.mxu1 (!%p249_p9), %v1713_v2  ;;  %v1715_v5 = vmov (!%p249_p9), 1983009808   ;;  %vm492_vm2 = vsmask.f32 (!%p249_p9), 1280  ;;  %v1574_v28 = vld [vmem:[%s2146_s3 + $0x10] sm:$0xff] (!%p249_p9)  }
  0x11   : > { %1458 = vmatpush3.bf16.msra.mxu0 (!%p249_p9), %v1566_v0  ;;  %1459 = vmatprep.mubr.msk.bf16.mxu0 (!%p249_p9), %vm1714_vm0, %v1713_v2  ;;  %v327_v4 = vshrl.u32 (!%p249_p9), %v326_v1, 7  ;;  %v324_v6 = vunpack.c.l.s4 (!%p249_p9), %v1715_v5  ;;  %vm493_vm3 = vsmask.f32 (!%p249_p9), 3336  ;;  %vm495_vm4 = vsmask.f32 (!%p249_p9), 5392  ;;  %v1575_v38 = vld [vmem:[%s2146_s3 + $0x18] sm:$0xff] (!%p249_p9)  }
  0x12   : > { %1464 = vmatpush3.bf16.msra.mxu1 (!%p249_p9), %v1567_v3  ;;  %1465 = vmatprep.mubr.msk.bf16.mxu1 (!%p249_p9), %vm1714_vm0, %v1713_v2  ;;  %vm497_vm5 = vsmask.f32 (!%p249_p9), 7448  ;;  %vm1876_vm6 = vmor (!%p249_p9), %vm492_vm2, %vm493_vm3  ;;  %v1579_v33 = vld [vmem:[%s2146_s3 + $0x28] sm:$0xff] (!%p249_p9)   ;;  %vm1188_vm9 = vcmask (!%p249_p9), 261120   ;;  %vm1222_vm10 = vcmask (!%p249_p9), 254976   ;;  %s1438_s30 = sshll.u32 (!%p249_p9), %s1782_s26, 7 }
  0x13   : > { %1469 = vmatprep.subr.bf16.mxu0 (!%p249_p9), %v1713_v2  ;;  %1475 = vmatprep.subr.bf16.mxu1 (!%p249_p9), %v1713_v2  ;;  %v325_v7 = vunpack.c.0.s8 (!%p249_p9), %v324_v6  ;;  %vm1887_vm7 = vmor (!%p249_p9), %vm1876_vm6, %vm495_vm4  ;;  %s2027_s13 = scalar_lea.hbm (!%p249_p9), %s2148_s5, %s1438_s30 }
  0x14   : > { %vm1900_vm8 = vmor (!%p249_p9), %vm1887_vm7, %vm497_vm5 }
  0x15   : > { %v1827_v8 = vsub.s32 (!%p249_p9), %v325_v7, %v327_v4 }
  0x17   : > { %s289_s15 = scalar_select %p288_p10, %s1782_s26, 1 }
  0x19   : > { %s1511_s16 = smul.u32 80, %s289_s15 }
  0x1b   : > { %s1832_s19 = scalar_lea.vmem %s2143_s0, %s1511_s16  ;;  %s1716_s16 = smov [#allocation2]  }
  0x1c   : > { %v299_v9 = vld [vmem:[%s1832_s19 + $0x14] sm:$0x7]  ;;  %v1836_v10 = vld [vmem:[%s1832_s19 + $0x18] sm:$0x7]  ;;  %v1839_v11 = vld [vmem:[%s1832_s19 + $0x1c] sm:$0x7] }
  0x1d   : > { %v1842_v12 = vld [vmem:[%s1832_s19 + $0x20] sm:$0x7]  ;;  %v321_v13 = vcombine.low %v299_v9, %v1836_v10  ;;  %v1849_v16 = vld [vmem:[%s1832_s19 + $0x4] sm:$0x7]  ;;  %v1852_v17 = vld [vmem:[%s1832_s19 + $0x8] sm:$0x7] }
  0x1e   : > { %v294_v14 = vld [vmem:[%s1832_s19] sm:$0x7]  ;;  %v322_v15 = vcombine.low %v1839_v11, %v1842_v12  ;;  %v1855_v18 = vld [vmem:[%s1832_s19 + $0xc] sm:$0x7]  ;;  %v474_v23 = vrot.slane %v1849_v16, %v1827_v8  ;;  %v482_v26 = vrot.slane %v1852_v17, %v1827_v8  ;;  %v304_v52 = vld [vmem:[%s1832_s19 + $0x28] sm:$0x7] }
  0x1f   : > { %v466_v19 = vrot.slane %v294_v14, %v1827_v8  ;;  %v329_v20 = vrot.slane %v321_v13, %v1827_v8  ;;  %v393_v21 = vcombine.low %v294_v14, %v1849_v16  ;;  %v394_v22 = vcombine.low %v1852_v17, %v1855_v18  ;;  %v305_v57 = vld [vmem:[%s1832_s19 + $0x2c] sm:$0x7]  ;;  %v306_v63 = vld [vmem:[%s1832_s19 + $0x30] sm:$0x7]  ;;  %v307_v9 = vld [vmem:[%s1832_s19 + $0x34] sm:$0x7] }
  0x20   : > { %v336_v24 = vrot.slane %v322_v15, %v1827_v8  ;;  %v490_v27 = vrot.slane %v1855_v18, %v1827_v8  ;;  %v475_v31 = vcombine.high %v474_v23, %v474_v23  ;;  %v483_v35 = vcombine.high %v482_v26, %v482_v26  ;;  %s1593_s17 = sshll.u32 %s1716_s16, 4  ;;  %s1594_s17 = int_to_ptr.vmem [resolvable:$false] %s1593_s17 }
  0x21   : > { %v467_v25 = vcombine.high %v466_v19, %v466_v19  ;;  %v401_v29 = vrot.slane %v393_v21, %v1827_v8  ;;  %v408_v30 = vrot.slane %v394_v22, %v1827_v8  ;;  %v500_v32 = vshrl.u32 %v466_v19, 16  ;;  %s1595_s18 = scalar_lea.vmem %s1594_s17, 256 }
  0x22   : > { %v337_v34 = vcombine.low %v329_v20, %v336_v24  ;;  %v491_v36 = vcombine.high %v490_v27, %v490_v27  ;;  %v503_v37 = vshll.u32 %v466_v19, 16  ;;  %v514_v42 = vshrl.u32 %v474_v23, 16 }
  0x23   : > { %v409_v39 = vcombine.low %v401_v29, %v408_v30  ;;  %v502_v40 = vrot.slane %v500_v32, 6  ;;  %v509_v41 = vshll.u32 %v467_v25, 16  ;;  %v517_v44 = vshll.u32 %v474_v23, 16 }
  0x24   : > { %1460 = vmatmul.mubr.msk.bf16.vlgmr.msra.gmra.mrb[0].mxu0 %vm344_vm1, %v337_v34  ;;  %v505_v43 = vrot.slane %v503_v37, 7  ;;  %v523_v45 = vshll.u32 %v475_v31, 16  ;;  %v528_v46 = vshrl.u32 %v482_v26, 16  ;;  %v516_v49 = vrot.slane %v514_v42, 6 }
  0x25   : > { %1466 = vmatmul.mubr.msk.bf16.vlgmr.msra.gmra.mrb[0].mxu1 %vm344_vm1, %v409_v39  ;;  %v511_v48 = vrot.slane %v509_v41, 7  ;;  %v531_v50 = vshll.u32 %v482_v26, 16  ;;  %v537_v51 = vshll.u32 %v483_v35, 16  ;;  %1470 = vmatpush3.bf16.msra.mxu0 %v1574_v28  ;;  %v519_v54 = vrot.slane %v517_v44, 7 }
  0x26   : > { %v506_v53 = vor.u32 %v505_v43, %v502_v40  ;;  %v530_v55 = vrot.slane %v528_v46, 6  ;;  %v542_v56 = vshrl.u32 %v490_v27, 16  ;;  %1476 = vmatpush3.bf16.msra.mxu1 %v1575_v38  ;;  %1471 = vmatprep.mubr.msk.bf16.mxu0 %vm1714_vm0, %v1713_v2  ;;  %v545_v59 = vshll.u32 %v490_v27, 16 }
  0x27   : > { %v533_v58 = vrot.slane %v531_v50, 7  ;;  %v551_v60 = vshll.u32 %v491_v36, 16  ;;  %1481 = vmatprep.subr.bf16.mxu0 %v1713_v2  ;;  %v525_v62 = vrot.slane %v523_v45, 7  ;;  %1477 = vmatprep.mubr.msk.bf16.mxu1 %vm1714_vm0, %v1713_v2  ;;  %v520_v3 = vor.u32 %v519_v54, %v516_v49  ;;  %v1576_v54 = vld [vmem:[%s2146_s3 + $0x20] sm:$0xff]  }
  0x28   : > { %v507_v0 = vrot.slane %v506_v53, 2  ;;  %v544_v1 = vrot.slane %v542_v56, 6  ;;  %v539_v4 = vrot.slane %v537_v51, 7  ;;  %1487 = vmatprep.subr.bf16.mxu1 %v1713_v2  ;;  %v547_v5 = vrot.slane %v545_v59, 7 }
  0x29   : > { %v534_v6 = vor.u32 %v533_v58, %v530_v55  ;;  %v553_v7 = vrot.slane %v551_v60, 7  ;;  %v634_v13 = vcombine.low %v304_v52, %v305_v57  ;;  %v521_v15 = vrot.slane %v520_v3, 2  ;;  %v1930_v34 = vld.sshfl [vmem:[%s1832_s19 + $0x3c] sm:$0x5f pattern:$0x76325410] }
  0x2a   : > { %v512_v14 = vsel %vm1900_vm8, %v507_v0, %v511_v48  ;;  %v635_v19 = vcombine.low %v306_v63, %v307_v9  ;;  %v785_v20 = vrot.slane %v304_v52, %v1827_v8  ;;  %v548_v22 = vor.u32 %v547_v5, %v544_v1  ;;  %v1933_v39 = vld.sshfl [vmem:[%s1832_s19 + $0x44] sm:$0x5f pattern:$0x76325410] }
  0x2b   : > { %v535_v21 = vrot.slane %v534_v6, 2  ;;  %v642_v23 = vrot.slane %v634_v13, %v1827_v8  ;;  %v793_v24 = vrot.slane %v305_v57, %v1827_v8  ;;  %v1916_v25 = vsel %vm1900_vm8, %v521_v15, %v525_v62 }
  0x2c   : > { %v649_v26 = vrot.slane %v635_v19, %v1827_v8  ;;  %v801_v27 = vrot.slane %v306_v63, %v1827_v8  ;;  %v809_v28 = vrot.slane %v307_v9, %v1827_v8  ;;  %v549_v30 = vrot.slane %v548_v22, 2 }
  0x2d   : > { %v1923_v29 = vsel %vm1900_vm8, %v535_v21, %v539_v4  ;;  %v558_v31 = vcombine.low %v512_v14, %v1916_v25  ;;  %v812_v32 = vshrl.u32 %v785_v20, 16  ;;  %v815_v36 = vshll.u32 %v785_v20, 16 }
  0x2e   : > { %v650_v35 = vcombine.low %v642_v23, %v649_v26  ;;  %v826_v37 = vshrl.u32 %v793_v24, 16  ;;  %v829_v38 = vshll.u32 %v793_v24, 16  ;;  %v1937_v40 = vsel %vm1900_vm8, %v549_v30, %v553_v7 }
  0x2f   : > { %v566_v41 = vrot.slane %v558_v31, %v1827_v8  ;;  %v814_v42 = vrot.slane %v812_v32, 6  ;;  %v840_v43 = vshrl.u32 %v801_v27, 16  ;;  %v559_v44 = vcombine.low %v1923_v29, %v1937_v40  ;;  %v303_v31 = vld [vmem:[%s1832_s19 + $0x24] sm:$0x7] }
  0x30   : > { %1478 = vmatmul.mubr.msk.bf16.vlgmr.msra.gmra.mrb[4].mxu1 %vm344_vm1, %v650_v35  ;;  %v817_v45 = vrot.slane %v815_v36, 7  ;;  %v828_v46 = vrot.slane %v826_v37, 6  ;;  %v831_v47 = vrot.slane %v829_v38, 7  ;;  %v843_v49 = vshll.u32 %v801_v27, 16  ;;  %v1582_v36 = vld [vmem:[%s2146_s3 + $0x30] sm:$0xff]  }
  0x31   : > { %v842_v48 = vrot.slane %v840_v43, 6  ;;  %v854_v50 = vshrl.u32 %v809_v28, 16  ;;  %v857_v51 = vshll.u32 %v809_v28, 16  ;;  %1488 = vmatpush3.bf16.msra.mxu1 %v1579_v33  ;;  %1489 = vmatprep.mubr.msk.bf16.mxu1 %vm1714_vm0, %v1713_v2  ;;  %v573_v52 = vrot.slane %v559_v44, %v1827_v8  ;;  %v1583_v43 = vld [vmem:[%s2146_s3 + $0x38] sm:$0xff]  }
  0x32   : > { %v786_v53 = vcombine.high %v785_v20, %v785_v20  ;;  %1499 = vmatprep.subr.bf16.mxu1 %v1713_v2  ;;  %v845_v55 = vrot.slane %v843_v49, 7  ;;  %v794_v58 = vcombine.high %v793_v24, %v793_v24  ;;  %v726_v60 = vcombine.low %v1930_v34, %v1933_v39  ;;  %v298_v20 = vld [vmem:[%s1832_s19 + $0x10] sm:$0x7]  ;;  %s2008_s19 = sand.u32 1, %s1703_s2  }
  0x33   : > { %v856_v56 = vrot.slane %v854_v50, 6  ;;  %v859_v57 = vrot.slane %v857_v51, 7  ;;  %v574_v59 = vcombine.low %v566_v41, %v573_v52  ;;  %v802_v62 = vcombine.high %v801_v27, %v801_v27  ;;  %s1394_s22 = sshll.u32 %s2008_s19, 3  ;;  %s1228_s14 = scalar_lea.sflag [#allocation3], %s2008_s19 }
  0x34   : > { %v810_v63 = vcombine.high %v809_v28, %v809_v28  ;;  %v818_v0 = vor.u32 %v817_v45, %v814_v42  ;;  %v821_v1 = vshll.u32 %v786_v53, 16  ;;  %v832_v3 = vor.u32 %v831_v47, %v828_v46  ;;  %s275_s23 = scalar_lea.vmem [#allocation2], %s1394_s22 }
  0x35   : > { %v835_v4 = vshll.u32 %v794_v58, 16  ;;  %1472 = vmatmul.mubr.msk.bf16.vlgmr.msra.gmra.mrb[4].mxu0 %vm344_vm1, %v574_v59  ;;  %v846_v5 = vor.u32 %v845_v55, %v842_v48  ;;  %v849_v6 = vshll.u32 %v802_v62, 16  ;;  %v860_v7 = vor.u32 %v859_v57, %v856_v56  ;;  %s1249_s29 = sshll.u32 %s275_s23, 4  ;;  %s2019_s29 = int_to_ptr.vmem [resolvable:$true] %s1249_s29 }
  0x36   : > { %v863_v9 = vshll.u32 %v810_v63, 16  ;;  %1482 = vmatpush3.bf16.msra.mxu0 %v1576_v54  ;;  %1483 = vmatprep.mubr.msk.bf16.mxu0 %vm1714_vm0, %v1713_v2  ;;  %v819_v13 = vrot.slane %v818_v0, 2  ;;  %v823_v14 = vrot.slane %v821_v1, 7  ;;  %v833_v15 = vrot.slane %v832_v3, 2  ;;  %v1586_v54 = vld [vmem:[%s2146_s3 + $0x40] sm:$0xff]   ;;  %s1589_s15 = scalar_lea.vmem %s2019_s29, 128  ;;  %p1596_p0 = scmp.lt.s32.totalorder %s2019_s29, %s1594_s17 }
  0x37   : > { %v837_v19 = vrot.slane %v835_v4, 7  ;;  %1493 = vmatprep.subr.bf16.mxu0 %v1713_v2  ;;  %v847_v21 = vrot.slane %v846_v5, 2  ;;  %v851_v22 = vrot.slane %v849_v6, 7  ;;  %v861_v23 = vrot.slane %v860_v7, 2  ;;  %p1590_p11 = scmp.ne.s32.totalorder %s2019_s29, %s1589_s15  ;;  %p1597_p1 = scmp.lt.s32.totalorder %s1595_s18, %s1589_s15 }
  0x38   : > { %v865_v24 = vrot.slane %v863_v9, 7  ;;  %v824_v26 = vsel %vm1900_vm8, %v819_v13, %v823_v14  ;;  %v943_v28 = vcombine.low %v1849_v16, %v1852_v17  ;;  %v944_v30 = vcombine.low %v1855_v18, %v298_v20 }
  0x39   : > { %v838_v27 = vsel %vm1900_vm8, %v833_v15, %v837_v19  ;;  %v852_v32 = vsel %vm1900_vm8, %v847_v21, %v851_v22  ;;  %v1091_v35 = vrot.slane %v298_v20, %v1827_v8  ;;  %v1016_v18 = vcombine.low %v1836_v10, %v1839_v11  ;;  %p1591_p12 = pnand %p1590_p11, %p1801_p5  ;;  %p1598_p2 = por %p1597_p1, %p1596_p0 }
  0x3a   : > { %v866_v33 = vsel %vm1900_vm8, %v861_v23, %v865_v24  ;;  %v870_v34 = vcombine.low %v824_v26, %v838_v27  ;;  %v1017_v39 = vcombine.low %v1842_v12, %v303_v31  ;;  %v951_v44 = vrot.slane %v943_v28, %v1827_v8 }
  0x3b   : > { %v871_v37 = vcombine.low %v852_v32, %v866_v33  ;;  %v1094_v16 = vshrl.u32 %v1091_v35, 16  ;;  %v1097_v17 = vshll.u32 %v1091_v35, 16  ;;  %v1092_v42 = vcombine.high %v1091_v35, %v1091_v35  ;;  %p1592_p13 = pneg %p1591_p12 }
  0x3c   : > { %v878_v38 = vrot.slane %v870_v34, %v1827_v8  ;;  %v958_v45 = vrot.slane %v944_v30, %v1827_v8  ;;  %v1024_v12 = vrot.slane %v1016_v18, %v1827_v8  ;;  %v1031_v49 = vrot.slane %v1017_v39, %v1827_v8 }
  0x3d   : > { %v885_v41 = vrot.slane %v871_v37, %v1827_v8  ;;  %1484 = vmatmul.mubr.msk.bf16.vlgmr.msra.gmra.mrb[8].mxu0 %vm344_vm1, %v726_v60  ;;  %v1096_v46 = vrot.slane %v1094_v16, 6  ;;  %v1099_v47 = vrot.slane %v1097_v17, 7  ;;  %v1103_v10 = vshll.u32 %v1092_v42, 16  ;;  %p1599_p3 = pnand %p1598_p2, %p1592_p13 }
  0x3e   : > { %1494 = vmatpush3.bf16.msra.mxu0 %v1582_v36  ;;  %1495 = vmatprep.mubr.msk.bf16.mxu0 %vm1714_vm0, %v1713_v2  ;;  %v959_v51 = vcombine.low %v951_v44, %v958_v45  ;;  %v1110_v53 = vcombine.low %v1916_v25, %v1923_v29  ;;  %v1032_v56 = vcombine.low %v1024_v12, %v1031_v49 }
  0x3f   : > { %v886_v48 = vcombine.low %v878_v38, %v885_v41  ;;  %1505 = vmatprep.subr.bf16.mxu0 %v1713_v2  ;;  %v1100_v11 = vor.u32 %v1099_v47, %v1096_v46  ;;  %v1105_v50 = vrot.slane %v1103_v10, 7  ;;  %v1430_v47 = vld [vmem:[%s2147_s4] ss:$0 sm:$0xff] }
  0x40   : > { %v1118_v58 = vrot.slane %v1110_v53, %v1827_v8 }
  0x41   : > { %1490 = vmatmul.mubr.msk.bf16.vlgmr.msra.gmra.mrb[8].mxu1 %vm344_vm1, %v886_v48  ;;  %v1101_v52 = vrot.slane %v1100_v11, 2 }
  0x42   : > { %1500 = vmatpush3.bf16.msra.mxu1 %v1583_v43  ;;  %1501 = vmatprep.mubr.msk.bf16.mxu1 %vm1714_vm0, %v1713_v2 }
  0x43   : > { %v1106_v55 = vsel %vm1900_vm8, %v1101_v52, %v1105_v50 }
  0x44   : > { %v1111_v57 = vcombine.low %v1937_v40, %v1106_v55 }
  0x45   : > { %1496 = vmatmul.mubr.msk.bf16.vlgmr.msra.gmra.mrb[12].mxu0 %vm344_vm1, %v959_v51 }
  0x46   : > { %1506 = vmatpush3.bf16.msra.mxu0 %v1586_v54  ;;  %1507 = vmatprep.mubr.msk.bf16.mxu0 %vm1714_vm0, %v1713_v2  ;;  %v1125_v25 = vrot.slane %v1111_v57, %v1827_v8 }
  0x48   : > { %v1126_v29 = vcombine.low %v1118_v58, %v1125_v25 }
  0x49   : > { %1502 = vmatmul.mubr.msk.bf16.vlgmr.msra.gmra.mrb[12].mxu1 %vm344_vm1, %v1032_v56 }
  0x4d   : > { %1508 = vmatmul.mubr.msk.bf16.vlgmr.msra.gmra.mrb[16].mxu0 %vm344_vm1, %v1126_v29 }
  0xf7   : > { %v382_v61 = vpop.f32.mrb[0].mxu0 }
  0xf8   : > { %v1461_v59 = vpop.f32.mrb[1].mxu0  ;;  %v453_v60 = vpop.f32.mrb[0].mxu1 }
  0xf9   : > { %v454_v62 = vadd.f32 %v453_v60, %v382_v61  ;;  %v385_v40 = vpop.f32.mrb[2].mxu0  ;;  %v1467_v63 = vpop.f32.mrb[1].mxu1 }
  0xfa   : > { %v1462_v0 = vpop.f32.mrb[3].mxu0  ;;  %v456_v1 = vpop.f32.mrb[2].mxu1 }
  0xfb   : > { %v457_v3 = vadd.f32 %v456_v1, %v385_v40  ;;  %v1468_v4 = vpop.f32.mrb[3].mxu1 }
 0x103   : > { %v694_v5 = vpop.f32.mrb[4].mxu1 }
 0x104   : > { %v1479_v6 = vpop.f32.mrb[5].mxu1 }
 0x105   : > { %v697_v2 = vpop.f32.mrb[6].mxu1 }
 0x106   : > { %v1480_v7 = vpop.f32.mrb[7].mxu1 }
 0x108   : > { %v618_v8 = vpop.f32.mrb[4].mxu0 }
 0x109   : > { %v625_v9 = vadd.f32 %v618_v8, %v454_v62  ;;  %v1473_v13 = vpop.f32.mrb[5].mxu0 }
 0x10a   : > { %v621_v14 = vpop.f32.mrb[6].mxu0 }
 0x10b   : > { %v626_v15 = vadd.f32 %v621_v14, %v457_v3  ;;  %v701_v19 = vadd.f32 %v694_v5, %v625_v9  ;;  %v1474_v20 = vpop.f32.mrb[7].mxu0 }
 0x10d   : > { %v702_v21 = vadd.f32 %v697_v2, %v626_v15 }
 0x110   : > { %v770_v22 = vpop.f32.mrb[8].mxu0 }
 0x111   : > { %v777_v23 = vadd.f32 %v770_v22, %v701_v19  ;;  %v1485_v24 = vpop.f32.mrb[9].mxu0 }
 0x112   : > { %v773_v26 = vpop.f32.mrb[10].mxu0 }
 0x113   : > { %v778_v27 = vadd.f32 %v773_v26, %v702_v21  ;;  %v1486_v30 = vpop.f32.mrb[11].mxu0 }
 0x114   : > { %v930_v28 = vpop.f32.mrb[8].mxu1 }
 0x115   : > { %v937_v31 = vadd.f32 %v930_v28, %v777_v23  ;;  %v1491_v32 = vpop.f32.mrb[9].mxu1 }
 0x116   : > { %v933_v33 = vpop.f32.mrb[10].mxu1 }
 0x117   : > { %v938_v34 = vadd.f32 %v933_v33, %v778_v27  ;;  %v1492_v35 = vpop.f32.mrb[11].mxu1 }
 0x118   : > { %v1003_v36 = vpop.f32.mrb[12].mxu0 }
 0x119   : > { %v1010_v37 = vadd.f32 %v1003_v36, %v937_v31  ;;  %v1497_v38 = vpop.f32.mrb[13].mxu0 }
 0x11a   : > { %v1006_v16 = vpop.f32.mrb[14].mxu0 }
 0x11b   : > { %v1011_v17 = vadd.f32 %v1006_v16, %v938_v34  ;;  %v1498_v39 = vpop.f32.mrb[15].mxu0 }
 0x11c   : > { %v1076_v18 = vpop.f32.mrb[12].mxu1 }
 0x11d   : > { %v1083_v41 = vadd.f32 %v1076_v18, %v1010_v37  ;;  %v1503_v42 = vpop.f32.mrb[13].mxu1 }
 0x11e   : > { %v1079_v43 = vpop.f32.mrb[14].mxu1 }
 0x11f   : > { %v1084_v44 = vadd.f32 %v1079_v43, %v1011_v17  ;;  %v1504_v45 = vpop.f32.mrb[15].mxu1 }
 0x120   : > { %v1170_v46 = vpop.f32.mrb[16].mxu0 }
 0x121   : > { %v1177_v48 = vadd.f32 %v1170_v46, %v1083_v41  ;;  %v1509_v10 = vpop.f32.mrb[17].mxu0 }
 0x122   : > { %v1173_v11 = vpop.f32.mrb[18].mxu0 }
 0x123   : > { %v1186_v12 = vadd.f32 %v1430_v47, %v1177_v48  ;;  %v1178_v49 = vadd.f32 %v1173_v11, %v1084_v44  ;;  %v1510_v50 = vpop.f32.mrb[19].mxu0 }
 0x125   : > { %v1214_v51 = vcombine.high %v1186_v12, %v1186_v12  ;;  %v1218_v52 = vpack.c.bf16 %v1186_v12, %v1186_v12  ;;  %v1200_v53 = vmul.f32 %v1186_v12, %v1186_v12  ;;  %v1187_v54 = vadd.f32 %v1430_v47, %v1178_v49 }
 0x126   : > { %v1189_v55 = vsel %vm1188_vm9, %v1186_v12, 0.0 }
 0x127   : > { %v1219_v56 = vpack.c.bf16 %v1214_v51, %v1214_v51  ;;  %1223 = vst.msk [vmem:[%s275_s23] sm:$0x3] %vm1222_vm10, %v1218_v52  ;;  %v1190_v57 = vsel %vm1188_vm9, %v1187_v54, 0.0  ;;  %v1201_v58 = vmul.f32 %v1187_v54, %v1187_v54  ;;  %v1215_v25 = vcombine.high %v1187_v54, %v1187_v54 }
 0x128   : > { %v1220_v29 = vpack.c.bf16 %v1187_v54, %v1187_v54  ;;  %v1191_v61 = vadd.f32 %v1190_v57, %v1189_v55  ;;  %v1202_v59 = vsel %vm1188_vm9, %v1200_v53, 0.0 }
 0x129   : > { %1224 = vst.msk [vmem:[%s275_s23 + $0x2] sm:$0x3] %vm1222_vm10, %v1219_v56  ;;  %v1203_v60 = vsel %vm1188_vm9, %v1201_v58, 0.0  ;;  %v1221_v62 = vpack.c.bf16 %v1215_v25, %v1215_v25 }
 0x12a   : > { %1225 = vst.msk [vmem:[%s275_s23 + $0x4] sm:$0x3] %vm1222_vm10, %v1220_v29  ;;  %v1192_v40 = vrot.slane %v1191_v61, 4  ;;  %v1204_v63 = vadd.f32 %v1203_v60, %v1202_v59 }
 0x12b   : > { %1226 = vst.msk [vmem:[%s275_s23 + $0x6] sm:$0x3] %vm1222_vm10, %v1221_v62 }
 0x12c   : > { %v1205_v0 = vrot.slane %v1204_v63, 4  ;;  %v1193_v1 = vadd.f32 %v1192_v40, %v1191_v61 }
 0x12d   : > { %1602 = shalt.err (!%p1599_p3)
}
 0x12e   : > { %s1603_s20 = scalar_lea.hbm %s2027_s13, 128  ;;  %s1607_s23 = scalar_lea.hbm %s2148_s5, 256 }
 0x12f   : > { %p1604_p4 = scmp.ne.s32.totalorder %s2027_s13, %s1603_s20  ;;  %p1608_p9 = scmp.lt.u32.totalorder %s2027_s13, %s2148_s5 }
 0x130   : > { %p1609_p10 = scmp.lt.u32.totalorder %s1607_s23, %s1603_s20  ;;  %p1611_p12 = scmp.lt.u32.totalorder %s1603_s20, %s2027_s13 }
 0x131   : > { %p1605_p7 = pnand %p1604_p4, %p1801_p5 }
 0x132   : > { %p1610_p11 = por %p1609_p10, %p1608_p9 }
 0x133   : > { %p1606_p8 = pneg %p1605_p7 }
 0x134   : > { %p1612_p13 = por %p1611_p12, %p1610_p11 }
 0x136   : > { %p1613_p0 = pnand %p1612_p13, %p1606_p8 }
 0x138   : > { %1616 = shalt.err (!%p1613_p0)
}
 0x139   : > { %s1717_s12 = smov 32   ;;  %s1718_s15 = smov 2   ;;  %v1194_v3 = vrot.slane %v1193_v1, 2  ;;  %v1206_v4 = vadd.f32 %v1205_v0, %v1204_v63  ;;  %vm1198_vm11 = vcmask 253952  }
 0x13a   : > { %1512 = dma.vmem_to_hbm [thread:$0]  (%p1801_p5), %s2019_s29, 128, %s2027_s13, %s1228_s14, %s1717_s12, %s1717_s12, %s1718_s15  }
 0x13b   : > { %v1195_v5 = vadd.f32 %v1194_v3, %v1193_v1  ;;  %s1232_s16 = sand.u32 1, %s1782_s26   ;;  %v1207_v6 = vrot.slane %v1206_v4, 2  ;;  %s1434_s17 = sshll.u32 %s1782_s26, 4 }
 0x13c   : > { %s281_s18 = scalar_lea.vmem [#allocation4], %s2008_s19  ;;  %s287_s21 = scalar_lea.vmem [#allocation6], %s2008_s19 }
 0x13d   : > { %s1265_s20 = sshll.u32 %s281_s18, 4  ;;  %v1196_v2 = vrot.slane %v1195_v5, 1  ;;  %v1208_v7 = vadd.f32 %v1207_v6, %v1206_v4  ;;  %s1278_s22 = sshll.u32 %s287_s21, 4  ;;  %s2065_s20 = int_to_ptr.vmem [resolvable:$true] %s1265_s20  ;;  %s2073_s22 = int_to_ptr.vmem [resolvable:$true] %s1278_s22 }
 0x13e   : > { %s2063_s29 = scalar_lea.hbm %s2149_s6, %s1434_s17  ;;  %s2071_s14 = scalar_lea.hbm %s2150_s7, %s1434_s17 }
 0x13f   : > { %v1197_v8 = vadd.f32 %v1196_v2, %v1195_v5  ;;  %v1209_v9 = vrot.slane %v1208_v7, 1  ;;  %s2075_s11 = scalar_lea.sflag [#allocation5], %s1232_s16  ;;  %s1617_s12 = scalar_lea.vmem %s2065_s20, 16 }
 0x140   : > { %p1618_p1 = scmp.ne.s32.totalorder %s2065_s20, %s1617_s12  ;;  %s1719_s15 = smov [#allocation4]  }
 0x141   : > { %1199 = vst.msk [vmem:[%s281_s18] sm:$0x1] %vm1198_vm11, %v1197_v8  ;;  %v1210_v13 = vadd.f32 %v1209_v9, %v1208_v7  ;;  %s1621_s23 = sshll.u32 %s1719_s15, 4  ;;  %s1622_s23 = int_to_ptr.vmem [resolvable:$false] %s1621_s23 }
 0x142   : > { %p1619_p2 = pnand %p1618_p1, %p1801_p5  ;;  %s1623_s30 = scalar_lea.vmem %s1622_s23, 32 }
 0x143   : > { %p1624_p4 = scmp.lt.s32.totalorder %s2065_s20, %s1622_s23  ;;  %p1625_p7 = scmp.lt.s32.totalorder %s1623_s30, %s1617_s12 }
 0x144   : > { %p1620_p3 = pneg %p1619_p2 }
 0x145   : > { %p1626_p8 = por %p1625_p7, %p1624_p4 }
 0x147   : > { %p1627_p9 = pnand %p1626_p8, %p1620_p3 }
 0x149   : > { %1630 = shalt.err (!%p1627_p9)
}
 0x14a   : > { %s1631_s16 = scalar_lea.hbm %s2063_s29, 16  ;;  %s1635_s26 = scalar_lea.hbm %s2149_s6, 32 }
 0x14b   : > { %p1632_p10 = scmp.ne.s32.totalorder %s2063_s29, %s1631_s16  ;;  %p1636_p13 = scmp.lt.u32.totalorder %s2063_s29, %s2149_s6 }
 0x14c   : > { %p1637_p0 = scmp.lt.u32.totalorder %s1635_s26, %s1631_s16  ;;  %p1639_p2 = scmp.lt.u32.totalorder %s1631_s16, %s2063_s29 }
 0x14d   : > { %p1633_p11 = pnand %p1632_p10, %p1801_p5 }
 0x14e   : > { %p1638_p1 = por %p1637_p0, %p1636_p13 }
 0x14f   : > { %p1634_p12 = pneg %p1633_p11 }
 0x150   : > { %p1640_p3 = por %p1639_p2, %p1638_p1 }
 0x152   : > { %p1641_p4 = pnand %p1640_p3, %p1634_p12 }
 0x154   : > { %1644 = shalt.err (!%p1641_p4)
}
 0x155   : > { %1513 = dma.vmem_to_hbm [thread:$0]  (%p1801_p5), %s2065_s20, 16, %s2063_s29, %s2075_s11   ;;  %1211 = vst.msk [vmem:[%s287_s21] sm:$0x1] %vm1198_vm11, %v1210_v13 }
 0x156   : > { %s1645_s12 = scalar_lea.vmem %s2073_s22, 16  ;;  %s1720_s23 = smov [#allocation6]  }
 0x157   : > { %p1646_p7 = scmp.ne.s32.totalorder %s2073_s22, %s1645_s12  ;;  %s1649_s30 = sshll.u32 %s1720_s23, 4  ;;  %s1650_s30 = int_to_ptr.vmem [resolvable:$false] %s1649_s30 }
 0x158   : > { %s1651_s16 = scalar_lea.vmem %s1650_s30, 32  ;;  %p1652_p10 = scmp.lt.s32.totalorder %s2073_s22, %s1650_s30 }
 0x159   : > { %p1647_p8 = pnand %p1646_p7, %p1801_p5  ;;  %p1653_p11 = scmp.lt.s32.totalorder %s1651_s16, %s1645_s12 }
 0x15b   : > { %p1648_p9 = pneg %p1647_p8  ;;  %p1654_p12 = por %p1653_p11, %p1652_p10 }
 0x15d   : > { %p1655_p13 = pnand %p1654_p12, %p1648_p9 }
 0x15f   : > { %1658 = shalt.err (!%p1655_p13)
}
 0x160   : > { %s1659_s19 = scalar_lea.hbm %s2071_s14, 16  ;;  %s1663_s29 = scalar_lea.hbm %s2150_s7, 32 }
 0x161   : > { %p1660_p0 = scmp.ne.s32.totalorder %s2071_s14, %s1659_s19  ;;  %p1664_p3 = scmp.lt.u32.totalorder %s2071_s14, %s2150_s7 }
 0x162   : > { %p1665_p4 = scmp.lt.u32.totalorder %s1663_s29, %s1659_s19  ;;  %p1667_p8 = scmp.lt.u32.totalorder %s1659_s19, %s2071_s14 }
 0x163   : > { %p1661_p1 = pnand %p1660_p0, %p1801_p5 }
 0x164   : > { %p1666_p7 = por %p1665_p4, %p1664_p3 }
 0x165   : > { %p1662_p2 = pneg %p1661_p1 }
 0x166   : > { %p1668_p9 = por %p1667_p8, %p1666_p7 }
 0x168   : > { %p1669_p10 = pnand %p1668_p9, %p1662_p2 }
 0x16a   : > { %1672 = shalt.err (!%p1669_p10)
}
 0x16b   : > { %1514 = dma.vmem_to_hbm [thread:$0]  (%p1801_p5), %s2073_s22, 16, %s2071_s14, %s2075_s11  }
 0x16c PF: > { %p1528_p11 = scmp.ge.s32.totalorder %s1711_s25, 2  ;;  %s1290_s26 = sand.u32 1, %s1699_s1  }
 0x16d   : > { %s1291_s13 = scalar_lea.sflag [#allocation3], %s1290_s26 }
 0x16e   : > { %p1519_p12 = pnand %p1528_p11, %p1805_p6 }
 0x170   : > { %1690 = dma.done.wait (!%p1519_p12), %s1291_s13, 128  }
 0x171   : > { %1692 = vsyncadd (!%p1519_p12), %s1291_s13, 4294967168  ;;  %s1299_s15 = sand.u32 1, %s1390_s27  }
 0x172   : > { %s1300_s12 = scalar_lea.sflag [#allocation5], %s1299_s15 }
 0x173   : > { %1694 = dma.done.wait (!%p1519_p12), %s1300_s12, 32  }
 0x174   : > { %1696 = vsyncadd (!%p1519_p12), %s1300_s12, 4294967264  ;;  %p21_p5 = scmp.ge.s32.totalorder %s1786_s28, 4   ;;  %s2159_s1 = smov %s1703_s2 }
 0x175   : > { %s2160_s2 = smov %s1707_s24  ;;  %s2161_s24 = smov %s1799_s8 }
 0x176   : > { %s2162_s25 = smov %s1786_s28  ;;  %23 = sbr.rel (!%p21_p5) target bundleno = 5 (0x5), region = 115 }
 0x17d   :  { %1312 = vsyncpa [#allocation3], 1 }
 0x17e   :  { %1314 = vsyncpa [#allocation3 + $0x1], 1 }
 0x17f   :  { %1315 = vsyncpa [#allocation5], 1 }
 0x180   :  { %1317 = vsyncpa [#allocation5 + $0x1], 1 }

</bundles_post_ra>
